<compile_context>
chip_gen: v7x
topology: tpu7x:2x2x1
jax: 0.10.0
libtpu: 0.0.40
codegen_flags: <defaults>
</compile_context>

<pallas_src>
import math

import jax
import jax.numpy as jnp
from jax.experimental import pallas as pl
from jax.experimental.pallas import tpu as pltpu

# Hyperparameters from the PyTorch __init__ (module has no learnable parameters).
BASE_TEMPERATURE = 5.0
MIN_TEMPERATURE = 1.0
ALPHA = 0.5
NOISE_STD = 0.1

_TARGET_TILE_BYTES = 2 << 20   # ~2 MiB per f32 input stream per tile
_MAX_TILE_ROWS = 512
_LOG2 = math.log(2.0)


def _hw_config():
    """(vmem_limit_bytes, n_parallel_splits) — generation aware, CPU/interpret safe."""
    vmem_limit = 64 << 20
    n_splits = 1
    try:
        dev = jax.devices()[0]
        if dev.platform == "tpu":
            try:
                cap = int(pltpu.get_tpu_info().vmem_capacity_bytes)
                # ~48 MiB on v7x (64 MiB/TC), ~96 MiB on v5e/v6e (128 MiB/TC).
                vmem_limit = min((cap * 3) // 4, 100 << 20)
            except Exception:
                pass
            nc = getattr(dev, "num_cores", None)
            if isinstance(nc, int) and 1 <= nc <= 8:
                n_splits = nc            # 2 TensorCores per chip on v7x, 1 on v5e/v6e
    except Exception:
        pass
    return vmem_limit, n_splits


def _choose_tiling(batch, n, n_splits):
    """Pick (tile_rows, tiles_per_split, padded_batch)."""
    row_bytes = 4 * n
    tb = (_TARGET_TILE_BYTES // row_bytes) // 8 * 8
    tb = max(8, min(_MAX_TILE_ROWS, tb))
    per_split = -(-batch // n_splits)
    tb = min(tb, max(8, -(-per_split // 8) * 8))
    chunk = tb * n_splits
    padded = -(-batch // chunk) * chunk
    return tb, padded // chunk, padded


def _sublane_partial(x):
    """(tb, n) -> (1, 8, n) partial sums; pure sublane-aligned vreg adds, no XLU."""
    tb, n = x.shape
    acc = x[0:8, :]
    for g in range(1, tb // 8):
        acc = acc + x[8 * g:8 * (g + 1), :]
    return acc.reshape(1, 8, n)


# ----------------------------------------------------------------------------------
# Pass 1: sum |noisy_teacher - student|  and  sum BCEWithLogits(student, labels)
# ----------------------------------------------------------------------------------
def _pass1_kernel(s_ref, t_ref, y_ref, disc_ref, bce_ref):
    @pl.when(pl.program_id(1) == 0)
    def _init():
        disc_ref[...] = jnp.zeros_like(disc_ref)
        bce_ref[...] = jnp.zeros_like(bce_ref)

    s = s_ref[...]
    nt = t_ref[...]
    y = y_ref[...]

    disc_ref[...] += _sublane_partial(jnp.abs(nt - s))
    # Numerically stable BCE-with-logits: max(x,0) - x*y + log1p(exp(-|x|)).
    bce = jnp.maximum(s, 0.0) - s * y + jnp.log1p(jnp.exp(-jnp.abs(s)))
    bce_ref[...] += _sublane_partial(bce)


# ----------------------------------------------------------------------------------
# Pass 2: sum (sigmoid(student/T) - sigmoid(noisy_teacher/T))^2 given T
# ----------------------------------------------------------------------------------
def _pass2_kernel(inv2t_ref, s_ref, t_ref, mse_ref):
    @pl.when(pl.program_id(1) == 0)
    def _init():
        mse_ref[...] = jnp.zeros_like(mse_ref)

    a = inv2t_ref[0, 0]  # = 0.5 / T
    # sigmoid(x/T) = 0.5*(tanh(x/(2T)) + 1)  ->  one tanh (EUP) per sigmoid.
    diff = 0.5 * (jnp.tanh(s_ref[...] * a) - jnp.tanh(t_ref[...] * a))
    mse_ref[...] += _sublane_partial(diff * diff)


# ----------------------------------------------------------------------------------
# Wrapper: forward pass of the module.
# ----------------------------------------------------------------------------------
def distillation_loss(student_logits, teacher_logits, true_labels, key, *,
                      base_temperature=BASE_TEMPERATURE,
                      min_temperature=MIN_TEMPERATURE,
                      alpha=ALPHA, noise_std=NOISE_STD):
    student = student_logits.astype(jnp.float32)
    teacher = teacher_logits.astype(jnp.float32)
    labels = true_labels.astype(jnp.float32)
    # TODO(synk): for hard {0,1} labels on v5e, stream labels as int8 and convert
    # in-kernel to halve that HBM stream; kept f32 here to support soft targets exactly.

    b, n = student.shape
    # torch.randn_like equivalent, drawn once in XLA; noisy_teacher is persisted and
    # streamed into both passes (no in-kernel PRNG, no regeneration in pass 2).
    noise = noise_std * jax.random.normal(key, (b, n), dtype=jnp.float32)
    noisy_teacher = teacher + noise

    vmem_limit, n_splits = _hw_config()
    tb, tpsplit, bp = _choose_tiling(b, n, n_splits)
    if bp != b:
        pad = ((0, bp - b), (0, 0))
        student = jnp.pad(student, pad)
        noisy_teacher = jnp.pad(noisy_teacher, pad)
        labels = jnp.pad(labels, pad)

    grid = (n_splits, tpsplit)
    tile_spec = pl.BlockSpec((tb, n), lambda c, i, tpc=tpsplit: (c * tpc + i, 0))
    part_spec = pl.BlockSpec((1, 8, n), lambda c, i: (c, 0, 0))
    part_shape = jax.ShapeDtypeStruct((n_splits, 8, n), jnp.float32)
    smem_scalar = pl.BlockSpec((1, 1), lambda c, i: (0, 0),
                               memory_space=pltpu.MemorySpace.SMEM)
    cparams = pltpu.CompilerParams(
        dimension_semantics=("parallel", "arbitrary"),
        vmem_limit_bytes=vmem_limit)

    # ---- pass 1: discrepancy sum (for the dynamic temperature) + BCE sum --------
    disc_part, bce_part = pl.pallas_call(
        _pass1_kernel,
        out_shape=(part_shape, part_shape),
        grid=grid,
        in_specs=[tile_spec, tile_spec, tile_spec],
        out_specs=(part_spec, part_spec),
        compiler_params=cparams,
        cost_estimate=pl.CostEstimate(flops=9 * bp * n,
                                      transcendentals=2 * bp * n,
                                      bytes_accessed=12 * bp * n),
    )(student, noisy_teacher, labels)

    count = float(b * n)
    discrepancy = jnp.sum(disc_part) / count
    temperature = jnp.maximum(base_temperature / (1.0 + discrepancy),
                              min_temperature)
    inv2t = (0.5 / temperature).astype(jnp.float32).reshape(1, 1)

    # ---- pass 2: distillation MSE at the dynamic temperature --------------------
    mse_part = pl.pallas_call(
        _pass2_kernel,
        out_shape=part_shape,
        grid=grid,
        in_specs=[smem_scalar, tile_spec, tile_spec],
        out_specs=part_spec,
        compiler_params=cparams,
        cost_estimate=pl.CostEstimate(flops=6 * bp * n,
                                      transcendentals=2 * bp * n,
                                      bytes_accessed=8 * bp * n),
    )(inv2t, student, noisy_teacher)

    distill = jnp.sum(mse_part) / count
    # Zero-padded rows contribute exactly log(2) each to the BCE sum (logit 0, label 0);
    # correct that here instead of masking inside the kernel.
    bce = (jnp.sum(bce_part) - float(bp - b) * float(n) * _LOG2) / count
    return alpha * distill + (1.0 - alpha) * bce


# ----------------------------------------------------------------------------------
# Pure-JAX mirror of the PyTorch forward (reference for the correctness check).
# ----------------------------------------------------------------------------------
def _reference_loss(student_logits, teacher_logits, true_labels, key, *,
                    base_temperature=BASE_TEMPERATURE,
                    min_temperature=MIN_TEMPERATURE,
                    alpha=ALPHA, noise_std=NOISE_STD):
    s = student_logits.astype(jnp.float32)
    t = teacher_logits.astype(jnp.float32)
    y = true_labels.astype(jnp.float32)
    noise = noise_std * jax.random.normal(key, t.shape, dtype=jnp.float32)
    noisy_t = t + noise
    discrepancy = jnp.mean(jnp.abs(noisy_t - s))
    temperature = jnp.maximum(base_temperature / (1.0 + discrepancy),
                              min_temperature)
    teacher_probs = jax.nn.sigmoid(noisy_t / temperature)
    student_probs = jax.nn.sigmoid(s / temperature)
    distill = jnp.mean((student_probs - teacher_probs) ** 2)
    ce = jnp.mean(jnp.maximum(s, 0.0) - s * y + jnp.log1p(jnp.exp(-jnp.abs(s))))
    return alpha * distill + (1.0 - alpha) * ce


if __name__ == "__main__":
    # Small (batch, num_classes) multi-label logits; batch intentionally NOT a multiple
    # of the tile so the padding/epilogue-correction path is exercised.
    B, N = 20, 256
    key = jax.random.PRNGKey(0)
    ks, kt, ky, kn = jax.random.split(key, 4)
    student_logits = jax.random.normal(ks, (B, N), dtype=jnp.float32)
    teacher_logits = 1.5 * jax.random.normal(kt, (B, N), dtype=jnp.float32)
    true_labels = jax.random.bernoulli(ky, 0.5, (B, N)).astype(jnp.float32)

    loss = jax.block_until_ready(
        distillation_loss(student_logits, teacher_logits, true_labels, kn))

    ref = jax.block_until_ready(
        _reference_loss(student_logits, teacher_logits, true_labels, kn))

    assert bool(jnp.isfinite(loss)), float(loss)
    assert jnp.allclose(loss, ref, rtol=2e-4, atol=1e-6), (float(loss), float(ref))
    print("KERNEL_OK")
</pallas_src>

<mosaic_0001>
module attributes {stable_mosaic.version = 11 : i64} {
  func.func @_pass1_kernel(%arg0: i32, %arg1: i32, %arg2: memref<24x256xf32, #tpu.memory_space<vmem>>, %arg3: memref<24x256xf32, #tpu.memory_space<vmem>>, %arg4: memref<24x256xf32, #tpu.memory_space<vmem>>, %arg5: memref<1x8x256xf32, #tpu.memory_space<vmem>>, %arg6: memref<1x8x256xf32, #tpu.memory_space<vmem>>) attributes {dimension_semantics = [#tpu.dimension_semantics<parallel>, #tpu.dimension_semantics<arbitrary>], iteration_bounds = array<i64: 1, 1>, scalar_prefetch = 0 : i64, scratch_operands = 0 : i64, tpu.core_type = #tpu.core_type<tc>, window_params = [{transform_indices = @transform_0, window_bounds = array<i64: 24, 256>}, {transform_indices = @transform_1, window_bounds = array<i64: 24, 256>}, {transform_indices = @transform_2, window_bounds = array<i64: 24, 256>}, {transform_indices = @transform_3, window_bounds = array<i64: 1, 8, 256>}, {transform_indices = @transform_4, window_bounds = array<i64: 1, 8, 256>}]} {
    %c0_i32 = arith.constant 0 : i32
    %0 = arith.cmpi eq, %arg1, %c0_i32 : i32
    %1 = arith.extui %0 : i1 to i32
    %c0_i32_0 = arith.constant 0 : i32
    %2 = arith.cmpi ne, %1, %c0_i32_0 : i32
    scf.if %2 {
      %cst_19 = arith.constant 0.000000e+00 : f32
      %36 = vector.broadcast %cst_19 : f32 to vector<1x8x256xf32>
      %c0_20 = arith.constant 0 : index
      %c0_21 = arith.constant 0 : index
      %c0_22 = arith.constant 0 : index
      %37 = vector.load %arg5[%c0_20, %c0_21, %c0_22] : memref<1x8x256xf32, #tpu.memory_space<vmem>>, vector<1x8x256xf32>
      tpu.vector_store %arg5[%c0_20, %c0_21, %c0_22], %36 {strides = array<i32>} : memref<1x8x256xf32, #tpu.memory_space<vmem>>, vector<1x8x256xf32>,
      %cst_23 = arith.constant 0.000000e+00 : f32
      %38 = vector.broadcast %cst_23 : f32 to vector<1x8x256xf32>
      %c0_24 = arith.constant 0 : index
      %c0_25 = arith.constant 0 : index
      %c0_26 = arith.constant 0 : index
      %39 = vector.load %arg6[%c0_24, %c0_25, %c0_26] : memref<1x8x256xf32, #tpu.memory_space<vmem>>, vector<1x8x256xf32>
      tpu.vector_store %arg6[%c0_24, %c0_25, %c0_26], %38 {strides = array<i32>} : memref<1x8x256xf32, #tpu.memory_space<vmem>>, vector<1x8x256xf32>,
    } else {
    }
    %c0 = arith.constant 0 : index
    %c0_1 = arith.constant 0 : index
    %3 = vector.load %arg2[%c0, %c0_1] : memref<24x256xf32, #tpu.memory_space<vmem>>, vector<24x256xf32>
    %c0_2 = arith.constant 0 : index
    %c0_3 = arith.constant 0 : index
    %4 = vector.load %arg3[%c0_2, %c0_3] : memref<24x256xf32, #tpu.memory_space<vmem>>, vector<24x256xf32>
    %c0_4 = arith.constant 0 : index
    %c0_5 = arith.constant 0 : index
    %5 = vector.load %arg4[%c0_4, %c0_5] : memref<24x256xf32, #tpu.memory_space<vmem>>, vector<24x256xf32>
    %c0_6 = arith.constant 0 : index
    %c0_7 = arith.constant 0 : index
    %c0_8 = arith.constant 0 : index
    %6 = vector.load %arg5[%c0_6, %c0_7, %c0_8] : memref<1x8x256xf32, #tpu.memory_space<vmem>>, vector<1x8x256xf32>
    %7 = arith.subf %4, %3 : vector<24x256xf32>
    %8 = math.absf %7 : vector<24x256xf32>
    %9 = vector.extract_strided_slice %8 {offsets = [0, 0], sizes = [8, 256], strides = [1, 1]} : vector<24x256xf32> to vector<8x256xf32>
    %10 = vector.extract_strided_slice %8 {offsets = [8, 0], sizes = [8, 256], strides = [1, 1]} : vector<24x256xf32> to vector<8x256xf32>
    %11 = arith.addf %9, %10 : vector<8x256xf32>
    %12 = vector.extract_strided_slice %8 {offsets = [16, 0], sizes = [8, 256], strides = [1, 1]} : vector<24x256xf32> to vector<8x256xf32>
    %13 = arith.addf %11, %12 : vector<8x256xf32>
    %14 = vector.shape_cast %13 : vector<8x256xf32> to vector<1x8x256xf32>
    %15 = arith.addf %6, %14 : vector<1x8x256xf32>
    %c0_9 = arith.constant 0 : index
    %c0_10 = arith.constant 0 : index
    %c0_11 = arith.constant 0 : index
    %16 = vector.load %arg5[%c0_9, %c0_10, %c0_11] : memref<1x8x256xf32, #tpu.memory_space<vmem>>, vector<1x8x256xf32>
    tpu.vector_store %arg5[%c0_9, %c0_10, %c0_11], %15 {strides = array<i32>} : memref<1x8x256xf32, #tpu.memory_space<vmem>>, vector<1x8x256xf32>,
    %cst = arith.constant 0.000000e+00 : f32
    %17 = vector.broadcast %cst : f32 to vector<24x256xf32>
    %18 = arith.maximumf %3, %17 : vector<24x256xf32>
    %19 = arith.mulf %3, %5 : vector<24x256xf32>
    %20 = arith.subf %18, %19 : vector<24x256xf32>
    %21 = math.absf %3 : vector<24x256xf32>
    %cst_12 = arith.constant 0.000000e+00 : f32
    %22 = vector.broadcast %cst_12 : f32 to vector<24x256xf32>
    %23 = arith.subf %22, %21 : vector<24x256xf32>
    %24 = math.exp %23 : vector<24x256xf32>
    %25 = math.log1p %24 : vector<24x256xf32>
    %26 = arith.addf %20, %25 : vector<24x256xf32>
    %c0_13 = arith.constant 0 : index
    %c0_14 = arith.constant 0 : index
    %c0_15 = arith.constant 0 : index
    %27 = vector.load %arg6[%c0_13, %c0_14, %c0_15] : memref<1x8x256xf32, #tpu.memory_space<vmem>>, vector<1x8x256xf32>
    %28 = vector.extract_strided_slice %26 {offsets = [0, 0], sizes = [8, 256], strides = [1, 1]} : vector<24x256xf32> to vector<8x256xf32>
    %29 = vector.extract_strided_slice %26 {offsets = [8, 0], sizes = [8, 256], strides = [1, 1]} : vector<24x256xf32> to vector<8x256xf32>
    %30 = arith.addf %28, %29 : vector<8x256xf32>
    %31 = vector.extract_strided_slice %26 {offsets = [16, 0], sizes = [8, 256], strides = [1, 1]} : vector<24x256xf32> to vector<8x256xf32>
    %32 = arith.addf %30, %31 : vector<8x256xf32>
    %33 = vector.shape_cast %32 : vector<8x256xf32> to vector<1x8x256xf32>
    %34 = arith.addf %27, %33 : vector<1x8x256xf32>
    %c0_16 = arith.constant 0 : index
    %c0_17 = arith.constant 0 : index
    %c0_18 = arith.constant 0 : index
    %35 = vector.load %arg6[%c0_16, %c0_17, %c0_18] : memref<1x8x256xf32, #tpu.memory_space<vmem>>, vector<1x8x256xf32>
    tpu.vector_store %arg6[%c0_16, %c0_17, %c0_18], %34 {strides = array<i32>} : memref<1x8x256xf32, #tpu.memory_space<vmem>>, vector<1x8x256xf32>,
    return
  }
  func.func @transform_0(%arg0: i32, %arg1: i32) -> (i32, i32) {
    %c1_i32 = arith.constant 1 : i32
    %0 = arith.muli %arg0, %c1_i32 : i32
    %1 = arith.addi %0, %arg1 : i32
    %c0_i32 = arith.constant 0 : i32
    %c0_i32_0 = arith.constant 0 : i32
    return %1, %c0_i32 : i32, i32
  }
  func.func @transform_1(%arg0: i32, %arg1: i32) -> (i32, i32) {
    %c1_i32 = arith.constant 1 : i32
    %0 = arith.muli %arg0, %c1_i32 : i32
    %1 = arith.addi %0, %arg1 : i32
    %c0_i32 = arith.constant 0 : i32
    %c0_i32_0 = arith.constant 0 : i32
    return %1, %c0_i32 : i32, i32
  }
  func.func @transform_2(%arg0: i32, %arg1: i32) -> (i32, i32) {
    %c1_i32 = arith.constant 1 : i32
    %0 = arith.muli %arg0, %c1_i32 : i32
    %1 = arith.addi %0, %arg1 : i32
    %c0_i32 = arith.constant 0 : i32
    %c0_i32_0 = arith.constant 0 : i32
    return %1, %c0_i32 : i32, i32
  }
  func.func @transform_3(%arg0: i32, %arg1: i32) -> (i32, i32, i32) {
    %c0_i32 = arith.constant 0 : i32
    %c0_i32_0 = arith.constant 0 : i32
    %c0_i32_1 = arith.constant 0 : i32
    return %arg0, %c0_i32, %c0_i32_0 : i32, i32, i32
  }
  func.func @transform_4(%arg0: i32, %arg1: i32) -> (i32, i32, i32) {
    %c0_i32 = arith.constant 0 : i32
    %c0_i32_0 = arith.constant 0 : i32
    %c0_i32_1 = arith.constant 0 : i32
    return %arg0, %c0_i32, %c0_i32_0 : i32, i32, i32
  }
}

</mosaic_0001>

<bundles_post_ra>
// kernel: tpu_custom_call.1
= control target key start
LH: loop header
LB: loop body
LE: loop exit
PB: predicated region body
PF: predicated region fallthrough
CT: control target
= control target key end

     0   :  { %10 = vsyncpa [#allocation3], 0  ;;  %s600_s0 = inlined_call_operand.hbm [shape: f32[24,256], index: 0, kind: input, shape index: {}]   ;;  %s601_s1 = inlined_call_operand.hbm [shape: f32[24,256], index: 1, kind: input, shape index: {}]   ;;  %s602_s2 = inlined_call_operand.hbm [shape: f32[24,256], index: 2, kind: input, shape index: {}]   ;;  %s603_s3 = inlined_call_operand.hbm [shape: f32[1,8,256], index: 3, kind: output, shape index: {0}]   ;;  %s604_s4 = inlined_call_operand.hbm [shape: f32[1,8,256], index: 4, kind: output, shape index: {1}]  }
   0x1   :  { %11 = vsyncpa [#allocation6], 0 }
   0x2   :  { %12 = vsyncpa [#allocation4], 0 }
   0x3   :  { %13 = vsyncpa [#allocation10], 0  ;;  %s420_s15 = smov [#allocation5]   ;;  %s421_s17 = smov [#allocation2]  }
   0x4   :  { %s41_s16 = sshll.u32 %s420_s15, 4  ;;  %s24_s18 = sshll.u32 %s421_s17, 4  ;;  %s42_s16 = int_to_ptr.vmem [resolvable:$true] %s41_s16  ;;  %s452_s18 = int_to_ptr.vmem [resolvable:$true] %s24_s18 }
   0x5   :  { %s302_s21 = scalar_lea.hbm %s601_s1, 768 }
   0x6   :  { %p303_p0 = scmp.ne.s32.totalorder %s601_s1, %s302_s21  ;;  %p306_p1 = scmp.lt.u32.totalorder %s302_s21, %s601_s1 }
   0x8   :  { %p308_p2 = pnand %p306_p1, %p303_p0 }
   0xa   :  { %311 = shalt.err (!%p308_p2)
}
   0xb   :  { %s312_s26 = scalar_lea.vmem %s42_s16, 768  ;;  %p317_p4 = scmp.lt.s32.totalorder %s42_s16, %s42_s16 }
   0xc   :  { %p313_p3 = scmp.ne.s32.totalorder %s42_s16, %s312_s26  ;;  %p318_p5 = scmp.lt.s32.totalorder %s312_s26, %s312_s26 }
   0xe   :  { %p319_p6 = por %p318_p5, %p317_p4 }
  0x10   :  { %p320_p7 = pnand %p319_p6, %p313_p3 }
  0x12   :  { %323 = shalt.err (!%p320_p7)
}
  0x13   :  { %s422_s27 = smov 256   ;;  %s423_s28 = smov 16  }
  0x14   :  { %47 = dma.hbm_to_vmem [thread:$0]  %s601_s1, 768, %s42_s16, [#allocation6], %s422_s27, %s422_s27, %s423_s28  }
  0x15   :  { %s324_s7 = scalar_lea.hbm %s600_s0, 768 }
  0x16   :  { %p325_p8 = scmp.ne.s32.totalorder %s600_s0, %s324_s7  ;;  %p328_p9 = scmp.lt.u32.totalorder %s324_s7, %s600_s0 }
  0x18   :  { %p330_p10 = pnand %p328_p9, %p325_p8 }
  0x1a   :  { %333 = shalt.err (!%p330_p10)
}
  0x1b   :  { %s334_s12 = scalar_lea.vmem %s452_s18, 768  ;;  %p339_p12 = scmp.lt.s32.totalorder %s452_s18, %s452_s18 }
  0x1c   :  { %p335_p11 = scmp.ne.s32.totalorder %s452_s18, %s334_s12  ;;  %p340_p13 = scmp.lt.s32.totalorder %s334_s12, %s334_s12 }
  0x1e   :  { %p341_p0 = por %p340_p13, %p339_p12 }
  0x20   :  { %p342_p1 = pnand %p341_p0, %p335_p11 }
  0x22   :  { %345 = shalt.err (!%p342_p1)
}
  0x23   :  { %30 = dma.hbm_to_vmem [thread:$0]  %s600_s0, 768, %s452_s18, [#allocation3], %s422_s27, %s422_s27, %s423_s28  }
  0x24   :  { %s424_s14 = smov [#allocation7]   ;;  %s346_s19 = scalar_lea.hbm %s602_s2, 768 }
  0x25   :  { %s58_s15 = sshll.u32 %s424_s14, 4  ;;  %p347_p2 = scmp.ne.s32.totalorder %s602_s2, %s346_s19  ;;  %s59_s15 = int_to_ptr.vmem [resolvable:$true] %s58_s15 }
  0x26   :  { %p350_p3 = scmp.lt.u32.totalorder %s346_s19, %s602_s2 }
  0x28   :  { %p352_p4 = pnand %p350_p3, %p347_p2 }
  0x2a   :  { %355 = shalt.err (!%p352_p4)
}
  0x2b   :  { %s356_s24 = scalar_lea.vmem %s59_s15, 768  ;;  %p361_p6 = scmp.lt.s32.totalorder %s59_s15, %s59_s15 }
  0x2c   :  { %p357_p5 = scmp.ne.s32.totalorder %s59_s15, %s356_s24  ;;  %p362_p7 = scmp.lt.s32.totalorder %s356_s24, %s356_s24 }
  0x2e   :  { %p363_p8 = por %p362_p7, %p361_p6 }
  0x30   :  { %p364_p9 = pnand %p363_p8, %p357_p5 }
  0x32   :  { %367 = shalt.err (!%p364_p9)
}
  0x33   :  { %64 = dma.hbm_to_vmem [thread:$0]  %s602_s2, 768, %s59_s15, [#allocation6], %s422_s27, %s422_s27, %s423_s28  }
  0x34   :  { %412 = dma.done.wait [#allocation3], 768  }
  0x35   :  { %413 = vsyncadd [#allocation3], 4294966528 }
  0x36   :  { %414 = dma.done.wait [#allocation6], 1536  }
  0x37   :  { %415 = vsyncadd [#allocation6], 4294965760  ;;  %v504_v0 = vld [vmem:[#allocation2] sm:$0xff]  ;;  %v506_v1 = vld [vmem:[#allocation2 + $0x10] sm:$0xff]  ;;  %s425_s2 = smov [#allocation8]  }
  0x38   :  { %v508_v2 = vld [vmem:[#allocation2 + $0x20] sm:$0xff]  ;;  %v94_v3 = vld [vmem:[#allocation5] sm:$0xff]  ;;  %v146_v6 = vand.u32 2147483647, %v504_v0  ;;  %v148_v10 = vand.u32 2147483647, %v506_v1 }
  0x39   :  { %v96_v4 = vld [vmem:[#allocation5 + $0x10] sm:$0xff]  ;;  %v98_v5 = vld [vmem:[#allocation5 + $0x20] sm:$0xff]  ;;  %v108_v7 = vsub.f32 %v94_v3, %v504_v0  ;;  %v515_v11 = vld [vmem:[#allocation2 + $0x8] sm:$0xff]  ;;  %v150_v13 = vand.u32 2147483647, %v508_v2  ;;  %s246_s25 = sshll.u32 %s425_s2, 4  ;;  %s247_s25 = int_to_ptr.vmem [resolvable:$true] %s246_s25 }
  0x3a   :  { %v110_v8 = vsub.f32 %v96_v4, %v506_v1  ;;  %v112_v9 = vsub.f32 %v98_v5, %v508_v2  ;;  %v517_v12 = vld [vmem:[#allocation2 + $0x18] sm:$0xff]  ;;  %v152_v14 = vsub.f32 0.0, %v146_v6  ;;  %v97_v16 = vld [vmem:[#allocation5 + $0x18] sm:$0xff]  ;;  %v154_v22 = vsub.f32 0.0, %v148_v10  ;;  %s368_s26 = scalar_lea.vmem %s247_s25, 256  ;;  %p373_p11 = scmp.lt.s32.totalorder %s247_s25, %s247_s25 }
  0x3b   :  { %v95_v15 = vld [vmem:[#allocation5 + $0x8] sm:$0xff]  ;;  %v114_v18 = vand.u32 2147483647, %v108_v7  ;;  %v156_v23 = vsub.f32 0.0, %v150_v13  ;;  %v521_v25 = vld [vmem:[#allocation2 + $0x28] sm:$0xff]  ;;  %v111_v26 = vsub.f32 %v97_v16, %v517_v12  ;;  %p369_p10 = scmp.ne.s32.totalorder %s247_s25, %s368_s26  ;;  %p374_p12 = scmp.lt.s32.totalorder %s368_s26, %s368_s26 }
  0x3c   :  { %v99_v17 = vld [vmem:[#allocation5 + $0x28] sm:$0xff]  ;;  %v116_v19 = vand.u32 2147483647, %v110_v8  ;;  %v118_v20 = vand.u32 2147483647, %v112_v9  ;;  %v109_v21 = vsub.f32 %v95_v15, %v515_v11 }
  0x3d   :  { %v158_v24 = vmul.f32 1.442695, %v152_v14  ;;  %v113_v28 = vsub.f32 %v99_v17, %v521_v25  ;;  %v147_v30 = vand.u32 2147483647, %v515_v11  ;;  %v162_v31 = vmul.f32 1.442695, %v154_v22  ;;  %p375_p13 = por %p374_p12, %p373_p11 }
  0x3e   :  { %v120_v27 = vadd.f32 %v116_v19, %v114_v18  ;;  %v115_v29 = vand.u32 2147483647, %v109_v21  ;;  %v166_v32 = vmul.f32 1.442695, %v156_v23  ;;  %v117_v33 = vand.u32 2147483647, %v111_v26 }
  0x3f   :  { %278 = vpow2.f32 %v158_v24  ;;  %v119_v35 = vand.u32 2147483647, %v113_v28  ;;  %v149_v36 = vand.u32 2147483647, %v517_v12  ;;  %v151_v37 = vand.u32 2147483647, %v521_v25  ;;  %p376_p0 = pnand %p375_p13, %p369_p10 }
  0x40   :  { %v122_v34 = vadd.f32 %v120_v27, %v118_v20  ;;  %280 = vpow2.f32 %v162_v31  ;;  %v121_v38 = vadd.f32 %v117_v33, %v115_v29  ;;  %v153_v39 = vsub.f32 0.0, %v147_v30 }
  0x41   :  { %282 = vpow2.f32 %v166_v32  ;;  %v155_v40 = vsub.f32 0.0, %v149_v36  ;;  %v157_v41 = vsub.f32 0.0, %v151_v37 }
  0x42   :  { %v123_v42 = vadd.f32 %v121_v38, %v119_v35  ;;  %v160_v43 = vmul.f32 1.442695, %v153_v39  ;;  %126 = vst [vmem:[#allocation8] sm:$0xff] %v122_v34 }
  0x43   :  { %v164_v44 = vmul.f32 1.442695, %v155_v40  ;;  %v168_v45 = vmul.f32 1.442695, %v157_v41 }
  0x44   :  { %284 = vpow2.f32 %v160_v43  ;;  %127 = vst [vmem:[#allocation8 + $0x8] sm:$0xff] %v123_v42 }
  0x45   :  { %286 = vpow2.f32 %v164_v44 }
  0x46   :  { %288 = vpow2.f32 %v168_v45 }
  0x47   :  { %379 = shalt.err (!%p376_p0)
}
  0x48   :  { %s380_s29 = scalar_lea.hbm %s603_s3, 256 }
  0x49   :  { %p381_p1 = scmp.ne.s32.totalorder %s603_s3, %s380_s29  ;;  %p384_p2 = scmp.lt.u32.totalorder %s380_s29, %s603_s3 }
  0x4b   :  { %p386_p3 = pnand %p384_p2, %p381_p1 }
  0x4d   :  { %389 = shalt.err (!%p386_p3)
}
  0x4e   :  { %249 = dma.vmem_to_hbm [thread:$0]  %s247_s25, 256, %s603_s3, [#allocation4]   ;;  %v279_v46 = vpop.eup %278  ;;  %v100_v47 = vld [vmem:[#allocation7] sm:$0xff]  ;;  %v102_v50 = vld [vmem:[#allocation7 + $0x10] sm:$0xff]  ;;  %v128_v54 = vmax.f32 %v504_v0, 0.0  ;;  %v130_v58 = vmax.f32 %v506_v1, 0.0 }
  0x4f   :  { %v170_v48 = vadd.f32 1.0, %v279_v46  ;;  %v281_v49 = vpop.eup %280  ;;  %v104_v53 = vld [vmem:[#allocation7 + $0x20] sm:$0xff]  ;;  %v134_v55 = vmul.f32 %v100_v47, %v504_v0  ;;  %v173_v56 = vmul.f32 -0.5, %v279_v46  ;;  %v136_v59 = vmul.f32 %v102_v50, %v506_v1  ;;  %v101_v14 = vld [vmem:[#allocation7 + $0x8] sm:$0xff]  ;;  %v103_v19 = vld [vmem:[#allocation7 + $0x18] sm:$0xff]  ;;  %s426_s3 = smov [#allocation9]  }
  0x50   :  { %v283_v51 = vpop.eup %282  ;;  %v188_v52 = vadd.f32 1.0, %v281_v49  ;;  %v191_v61 = vmul.f32 -0.5, %v281_v49  ;;  %v132_v63 = vmax.f32 %v508_v2, 0.0  ;;  %v138_v3 = vmul.f32 %v104_v53, %v508_v2  ;;  %v105_v32 = vld [vmem:[#allocation7 + $0x28] sm:$0xff]  ;;  %s256_s10 = sshll.u32 %s426_s3, 4  ;;  %s257_s10 = int_to_ptr.vmem [resolvable:$true] %s256_s10 }
  0x51   :  { %290 = vlog2.f32 %v170_v48  ;;  %v206_v57 = vadd.f32 1.0, %v283_v51  ;;  %v285_v60 = vpop.eup %284  ;;  %v209_v4 = vmul.f32 -0.5, %v283_v51  ;;  %v140_v0 = vsub.f32 %v128_v54, %v134_v55  ;;  %s390_s11 = scalar_lea.vmem %s257_s10, 256  ;;  %p395_p5 = scmp.lt.s32.totalorder %s257_s10, %s257_s10 }
  0x52   :  { %292 = vlog2.f32 %v188_v52  ;;  %v544_v62 = vpop.eup %286  ;;  %v179_v5 = vadd.f32 1.0, %v285_v60  ;;  %v174_v7 = vadd.f32 1.0, %v173_v56  ;;  %v142_v9 = vsub.f32 %v130_v58, %v136_v59  ;;  %p391_p4 = scmp.ne.s32.totalorder %s257_s10, %s390_s11  ;;  %p396_p6 = scmp.lt.s32.totalorder %s390_s11, %s390_s11 }
  0x53   :  { %294 = vlog2.f32 %v206_v57  ;;  %v548_v6 = vpop.eup %288  ;;  %v197_v8 = vadd.f32 1.0, %v544_v62  ;;  %v176_v1 = vand.u32 2147483647, %v279_v46  ;;  %v129_v10 = vmax.f32 %v515_v11, 0.0 }
  0x54   :  { %296 = vlog2.f32 %v179_v5  ;;  %v192_v13 = vadd.f32 1.0, %v191_v61  ;;  %v182_v15 = vmul.f32 -0.5, %v285_v60  ;;  %v215_v16 = vadd.f32 1.0, %v548_v6  ;;  %p397_p7 = por %p396_p6, %p395_p5 }
  0x55   :  { %298 = vlog2.f32 %v197_v8  ;;  %v144_v2 = vsub.f32 %v132_v63, %v138_v3  ;;  %v194_v17 = vand.u32 2147483647, %v281_v49  ;;  %v210_v18 = vadd.f32 1.0, %v209_v4 }
  0x56   :  { %v200_v20 = vmul.f32 -0.5, %v544_v62  ;;  %v175_v21 = vmul.f32 %v279_v46, %v174_v7  ;;  %v212_v22 = vand.u32 2147483647, %v283_v51  ;;  %v131_v23 = vmax.f32 %v517_v12, 0.0  ;;  %p398_p8 = pnand %p397_p7, %p391_p4 }
  0x57   :  { %300 = vlog2.f32 %v215_v16  ;;  %vm555_vm0 = vcmp.lt.f32.partialorder %v176_v1, 0.0004427343  ;;  %v133_v27 = vmax.f32 %v521_v25, 0.0  ;;  %v135_v28 = vmul.f32 %v101_v14, %v515_v11 }
  0x58   :  { %v218_v29 = vmul.f32 -0.5, %v548_v6  ;;  %v193_v31 = vmul.f32 %v281_v49, %v192_v13  ;;  %v137_v33 = vmul.f32 %v103_v19, %v517_v12  ;;  %v183_v34 = vadd.f32 1.0, %v182_v15 }
  0x59   :  { %vm563_vm1 = vcmp.lt.f32.partialorder %v194_v17, 0.0004427343  ;;  %v211_v37 = vmul.f32 %v283_v51, %v210_v18  ;;  %v185_v38 = vand.u32 2147483647, %v285_v60  ;;  %v201_v39 = vadd.f32 1.0, %v200_v20 }
  0x5a   :  { %vm569_vm2 = vcmp.lt.f32.partialorder %v212_v22, 0.0004427343  ;;  %v203_v12 = vand.u32 2147483647, %v544_v62  ;;  %v139_v45 = vmul.f32 %v105_v32, %v521_v25  ;;  %v219_v46 = vadd.f32 1.0, %v218_v29 }
  0x5b   :  { %v291_v24 = vpop.eup %290  ;;  %v141_v48 = vsub.f32 %v129_v10, %v135_v28  ;;  %v184_v49 = vmul.f32 %v285_v60, %v183_v34  ;;  %v221_v50 = vand.u32 2147483647, %v548_v6  ;;  %vm580_vm3 = vcmp.lt.f32.partialorder %v185_v38, 0.0004427343 }
  0x5c   :  { %v172_v30 = vmul.f32 0.6931472, %v291_v24  ;;  %v293_v35 = vpop.eup %292  ;;  %v202_v55 = vmul.f32 %v544_v62, %v201_v39  ;;  %v143_v57 = vsub.f32 %v131_v23, %v137_v33  ;;  %vm204_vm4 = vcmp.lt.f32.partialorder %v203_v12, 0.0004427343 }
  0x5d   :  { %v295_v40 = vpop.eup %294  ;;  %v190_v41 = vmul.f32 0.6931472, %v293_v35  ;;  %v220_v61 = vmul.f32 %v548_v6, %v219_v46  ;;  %v145_v3 = vsub.f32 %v133_v27, %v139_v45  ;;  %vm222_vm5 = vcmp.lt.f32.partialorder %v221_v50, 0.0004427343 }
  0x5e   :  { %v178_v11 = vsel %vm555_vm0, %v175_v21, %v172_v30  ;;  %v208_v43 = vmul.f32 0.6931472, %v295_v40  ;;  %v297_v51 = vpop.eup %296 }
  0x5f   :  { %v224_v44 = vadd.f32 %v178_v11, %v140_v0  ;;  %v196_v47 = vsel %vm563_vm1, %v193_v31, %v190_v41  ;;  %v299_v25 = vpop.eup %298  ;;  %v181_v58 = vmul.f32 0.6931472, %v297_v51 }
  0x60   :  { %v214_v52 = vsel %vm569_vm2, %v211_v37, %v208_v43  ;;  %v226_v53 = vadd.f32 %v196_v47, %v142_v9  ;;  %v199_v60 = vmul.f32 0.6931472, %v299_v25 }
  0x61   :  { %v228_v56 = vadd.f32 %v214_v52, %v144_v2  ;;  %v301_v63 = vpop.eup %300  ;;  %v187_v4 = vsel %vm580_vm3, %v184_v49, %v181_v58 }
  0x62   :  { %v232_v59 = vadd.f32 %v226_v53, %v224_v44  ;;  %v205_v0 = vsel %vm204_vm4, %v202_v55, %v199_v60  ;;  %v217_v7 = vmul.f32 0.6931472, %v301_v63  ;;  %v225_v8 = vadd.f32 %v187_v4, %v141_v48 }
  0x63   :  { %v227_v62 = vadd.f32 %v205_v0, %v143_v57 }
  0x64   :  { %v234_v5 = vadd.f32 %v232_v59, %v228_v56  ;;  %v223_v9 = vsel %vm222_vm5, %v220_v61, %v217_v7 }
  0x65   :  { %v229_v1 = vadd.f32 %v223_v9, %v145_v3  ;;  %v233_v10 = vadd.f32 %v227_v62, %v225_v8 }
  0x66   :  { %238 = vst [vmem:[#allocation9] sm:$0xff] %v234_v5 }
  0x67   :  { %v235_v13 = vadd.f32 %v233_v10, %v229_v1 }
  0x69   :  { %239 = vst [vmem:[#allocation9 + $0x8] sm:$0xff] %v235_v13 }
  0x6a   :  { %401 = shalt.err (!%p398_p8)
}
  0x6b   :  { %s402_s13 = scalar_lea.hbm %s604_s4, 256 }
  0x6c   :  { %p403_p9 = scmp.ne.s32.totalorder %s604_s4, %s402_s13  ;;  %p406_p10 = scmp.lt.u32.totalorder %s402_s13, %s604_s4 }
  0x6e   :  { %p408_p11 = pnand %p406_p10, %p403_p9 }
  0x70   :  { %411 = shalt.err (!%p408_p11)
}
  0x71   :  { %259 = dma.vmem_to_hbm [thread:$0]  %s257_s10, 256, %s604_s4, [#allocation10]  }
  0x72   :  { %416 = dma.done.wait [#allocation4], 256  }
  0x73   :  { %417 = vsyncadd [#allocation4], 4294967040 }
  0x74   :  { %418 = dma.done.wait [#allocation10], 256  }
  0x75   :  { %419 = vsyncadd [#allocation10], 4294967040 }
  0x76   :  { %266 = vsyncpa [#allocation3], 1 }
  0x77   :  { %267 = vsyncpa [#allocation6], 1 }
  0x78   :  { %268 = vsyncpa [#allocation4], 1 }
  0x79   :  { %269 = vsyncpa [#allocation10], 1 }

</bundles_post_ra>
